<compile_context>
chip_gen: v7x
topology: tpu7x:2x2x1
jax: 0.10.0
libtpu: 0.0.40
codegen_flags: <defaults>
</compile_context>

<pallas_src>
import jax
import jax.numpy as jnp
from jax.experimental import pallas as pl
from jax.experimental.pallas import tpu as pltpu


def neuronet_kernel(x_ref, w1_ref, b1_ref, w2_ref, b2_ref, o_ref):
    # linear1 on the MXU: (TILE_B, in) @ (in, hid), f32 accumulation.
    h = jnp.dot(x_ref[...], w1_ref[...], preferred_element_type=jnp.float32)
    h = jnp.maximum(h + b1_ref[...], 0.0)  # bias + ReLU on the VPU

    # linear2 (output width 1) computed transposed: contract w2 (1, hid) with
    # h (TILE_B, hid) over hid -> (1, TILE_B).  Keeps batch in lanes so the final
    # store is lane-dense (no 1-lane masked stores).  The lane-dim contraction may
    # lower to an XLU relayout of h; at these shapes it hides under the DMA stream.
    z = jax.lax.dot_general(
        w2_ref[...], h,
        dimension_numbers=(((1,), (1,)), ((), ())),
        preferred_element_type=jnp.float32,
    )                                       # (1, TILE_B)
    z = z + b2_ref[0]                       # scalar bias read from SMEM

    # sigmoid: exp on the EUP, approximate reciprocal (vrcp, ~2^-12 rel err) instead
    # of a VALU divide.  Drop approx=True if callers need tighter sigmoid precision.
    o_ref[...] = pl.reciprocal(1.0 + jnp.exp(-z), approx=True).astype(o_ref.dtype)


def neuronet_forward(x, w1_t, b1, w2, b2, *, tile_b=16384):
    """x: (B, in), w1_t: (in, hid), b1: (1, hid), w2: (1, hid), b2: (1,)."""
    B, in_size = x.shape
    hid = w1_t.shape[1]
    lane = 128

    # --- batch tile selection ------------------------------------------------
    # Memory-bound kernel: want multi-MiB x blocks per step, and >= 2 grid steps
    # when B is large so the "parallel" batch axis shards across v7x's 2 TCs.
    if B <= 1024:
        tb = B                                        # one block; dims == array dims
    else:
        half = ((pl.cdiv(B, 2) + lane - 1) // lane) * lane   # lane-aligned ~B/2
        tb = min(tile_b, half)
    grid = (pl.cdiv(B, tb),)                          # ragged last block handled by Pallas

    # --- VMEM budget (blocks pad their last dim to 128 lanes) -----------------
    in_pad = max(in_size, lane)
    hid_pad = max(hid, lane)
    est = (2 * tb * in_pad * x.dtype.itemsize         # double-buffered x block
           + tb * hid_pad * 4                         # f32 hidden intermediate
           + 2 * 8 * ((tb + lane - 1) // lane) * lane * 4   # double-buffered out block
           + (in_pad * hid_pad + 2 * 8 * hid_pad) * 4)      # resident weights/biases
    # Above v5e's 16 MiB default scoped VMEM, below v7x's 64 MiB physical VMEM.
    vmem_limit = int(min(48 * 2**20, max(32 * 2**20, est * 3 // 2)))

    # --- advisory cost hint for XLA's scheduler --------------------------------
    cost = pl.CostEstimate(
        flops=2 * B * in_size * hid + 4 * B * hid,
        transcendentals=B,                            # one exp per row
        bytes_accessed=(x.size * x.dtype.itemsize + B * 4
                        + (w1_t.size + b1.size + w2.size + b2.size) * 4),
    )
    # TODO(synk): for tiny B (demo scale) a plain jnp expression avoids the fixed
    # custom-call overhead entirely; we always dispatch the kernel here so it runs.

    out = pl.pallas_call(
        neuronet_kernel,
        out_shape=jax.ShapeDtypeStruct((1, B), jnp.float32),
        grid=grid,
        in_specs=[
            pl.BlockSpec((tb, in_size), lambda i: (i, 0)),      # x: streamed per tile
            pl.BlockSpec((in_size, hid), lambda i: (0, 0)),     # W1: VMEM-resident
            pl.BlockSpec((1, hid), lambda i: (0, 0)),           # b1: VMEM-resident
            pl.BlockSpec((1, hid), lambda i: (0, 0)),           # w2: VMEM-resident
            pl.BlockSpec(memory_space=pltpu.MemorySpace.SMEM),  # b2: scalar in SMEM
        ],
        out_specs=pl.BlockSpec((1, tb), lambda i: (0, i)),       # lane-dense output
        compiler_params=pltpu.CompilerParams(
            dimension_semantics=("parallel",),
            vmem_limit_bytes=vmem_limit,
        ),
        cost_estimate=cost,
    )(x, w1_t, b1, w2, b2)

    # Keep the explicit [:B] slice: any ragged-tail garbage never leaks past it.
    return out[0, :B].reshape(B, 1)


def _reference(x, w1, b1, w2, b2):
    return jax.nn.sigmoid(jnp.maximum(x @ w1.T + b1, 0.0) @ w2.T + b2)


if __name__ == "__main__":
    # Small shapes consistent with the module: NeuroNet(input_size=32, hidden_size=32).
    batch, input_size, hidden_size = 8, 32, 32

    key = jax.random.PRNGKey(0)
    kx, kw1, kb1, kw2, kb2, kx2 = jax.random.split(key, 6)

    x = jax.random.normal(kx, (batch, input_size), dtype=jnp.float32)

    # PyTorch Linear parameter shapes: W1 (hid, in), b1 (hid,), W2 (1, hid), b2 (1,).
    w1 = jax.random.normal(kw1, (hidden_size, input_size), dtype=jnp.float32) * 0.1
    b1 = jax.random.normal(kb1, (hidden_size,), dtype=jnp.float32) * 0.1
    w2 = jax.random.normal(kw2, (1, hidden_size), dtype=jnp.float32) * 0.1
    b2 = jax.random.normal(kb2, (1,), dtype=jnp.float32) * 0.1

    w1_t = w1.T                        # (in, hid) for x @ W1
    b1_r = b1.reshape(1, hidden_size)  # (1, hid)

    out = neuronet_forward(x, w1_t, b1_r, w2, b2)
    out = jax.block_until_ready(out)
    ref = _reference(x, w1, b1, w2, b2)
    assert out.shape == (batch, 1)
    assert jnp.allclose(out, ref, atol=2e-3, rtol=2e-3)

    # Second check: multi-step grid + ragged (non-tile-aligned) last block, no padding copy.
    b_big = 2000
    x_big = jax.random.normal(kx2, (b_big, input_size), dtype=jnp.float32)
    out_big = jax.block_until_ready(neuronet_forward(x_big, w1_t, b1_r, w2, b2))
    ref_big = _reference(x_big, w1, b1, w2, b2)
    assert out_big.shape == (b_big, 1)
    assert jnp.allclose(out_big, ref_big, atol=2e-3, rtol=2e-3)

    print("KERNEL_OK")
</pallas_src>

<mosaic_0001>
module attributes {stable_mosaic.version = 11 : i64} {
  func.func @neuronet_kernel(%arg0: i32, %arg1: memref<8x32xf32, #tpu.memory_space<vmem>>, %arg2: memref<32x32xf32, #tpu.memory_space<vmem>>, %arg3: memref<1x32xf32, #tpu.memory_space<vmem>>, %arg4: memref<1x32xf32, #tpu.memory_space<vmem>>, %arg5: memref<1xf32, #tpu.memory_space<smem>>, %arg6: memref<1x8xf32, #tpu.memory_space<vmem>>) attributes {dimension_semantics = [#tpu.dimension_semantics<parallel>], iteration_bounds = array<i64: 1>, scalar_prefetch = 0 : i64, scratch_operands = 0 : i64, tpu.core_type = #tpu.core_type<tc>, window_params = [{transform_indices = @transform_0, window_bounds = array<i64: 8, 32>}, {pipeline_mode = #tpu.pipeline_mode<synchronous>, transform_indices = @transform_1, window_bounds = array<i64: 32, 32>}, {pipeline_mode = #tpu.pipeline_mode<synchronous>, transform_indices = @transform_2, window_bounds = array<i64: 1, 32>}, {pipeline_mode = #tpu.pipeline_mode<synchronous>, transform_indices = @transform_3, window_bounds = array<i64: 1, 32>}, {transform_indices = @transform_4, window_bounds = array<i64: 1>}, {transform_indices = @transform_5, window_bounds = array<i64: 1, 8>}]} {
    %c0 = arith.constant 0 : index
    %c0_0 = arith.constant 0 : index
    %0 = vector.load %arg1[%c0, %c0_0] : memref<8x32xf32, #tpu.memory_space<vmem>>, vector<8x32xf32>
    %c0_1 = arith.constant 0 : index
    %c0_2 = arith.constant 0 : index
    %1 = vector.load %arg2[%c0_1, %c0_2] : memref<32x32xf32, #tpu.memory_space<vmem>>, vector<32x32xf32>
    %cst = arith.constant dense<0.000000e+00> : vector<8x32xf32>
    %2 = tpu.matmul %0, %1, %cst {dimension_numbers = #tpu.dot_dimension_numbers<[1], [0], [0], [1], [0, 0, 1, 1], [], []>} : vector<8x32xf32>, vector<32x32xf32>, vector<8x32xf32> -> vector<8x32xf32>
    %c0_3 = arith.constant 0 : index
    %c0_4 = arith.constant 0 : index
    %3 = vector.load %arg3[%c0_3, %c0_4] : memref<1x32xf32, #tpu.memory_space<vmem>>, vector<1x32xf32>
    %4 = vector.broadcast %3 : vector<1x32xf32> to vector<8x32xf32>
    %5 = arith.addf %2, %4 : vector<8x32xf32>
    %cst_5 = arith.constant 0.000000e+00 : f32
    %6 = vector.broadcast %cst_5 : f32 to vector<8x32xf32>
    %7 = arith.maximumf %5, %6 : vector<8x32xf32>
    %c0_6 = arith.constant 0 : index
    %c0_7 = arith.constant 0 : index
    %8 = vector.load %arg4[%c0_6, %c0_7] : memref<1x32xf32, #tpu.memory_space<vmem>>, vector<1x32xf32>
    %cst_8 = arith.constant dense<0.000000e+00> : vector<1x8xf32>
    %9 = tpu.matmul %8, %7, %cst_8 {dimension_numbers = #tpu.dot_dimension_numbers<[1], [1], [0], [0], [0, 0, 1, 0], [], []>} : vector<1x32xf32>, vector<8x32xf32>, vector<1x8xf32> -> vector<1x8xf32>
    %c0_9 = arith.constant 0 : index
    %10 = memref.load %arg5[%c0_9] : memref<1xf32, #tpu.memory_space<smem>>
    %11 = vector.broadcast %10 : f32 to vector<1x8xf32>
    %12 = arith.addf %9, %11 : vector<1x8xf32>
    %cst_10 = arith.constant 0.000000e+00 : f32
    %13 = vector.broadcast %cst_10 : f32 to vector<1x8xf32>
    %14 = arith.subf %13, %12 : vector<1x8xf32>
    %15 = math.exp %14 : vector<1x8xf32>
    %cst_11 = arith.constant 1.000000e+00 : f32
    %16 = vector.broadcast %cst_11 : f32 to vector<1x8xf32>
    %17 = arith.addf %16, %15 : vector<1x8xf32>
    %18 = tpu.reciprocal %17 {approx = true} : vector<1x8xf32> -> vector<1x8xf32>
    %c0_12 = arith.constant 0 : index
    %c0_13 = arith.constant 0 : index
    %19 = vector.load %arg6[%c0_12, %c0_13] : memref<1x8xf32, #tpu.memory_space<vmem>>, vector<1x8xf32>
    tpu.vector_store %arg6[%c0_12, %c0_13], %18 {strides = array<i32>} : memref<1x8xf32, #tpu.memory_space<vmem>>, vector<1x8xf32>,
    return
  }
  func.func @transform_0(%arg0: i32) -> (i32, i32) {
    %c0_i32 = arith.constant 0 : i32
    %c0_i32_0 = arith.constant 0 : i32
    return %arg0, %c0_i32 : i32, i32
  }
  func.func @transform_1(%arg0: i32) -> (i32, i32) {
    %c0_i32 = arith.constant 0 : i32
    %c0_i32_0 = arith.constant 0 : i32
    %c0_i32_1 = arith.constant 0 : i32
    return %c0_i32, %c0_i32_0 : i32, i32
  }
  func.func @transform_2(%arg0: i32) -> (i32, i32) {
    %c0_i32 = arith.constant 0 : i32
    %c0_i32_0 = arith.constant 0 : i32
    %c0_i32_1 = arith.constant 0 : i32
    return %c0_i32, %c0_i32_0 : i32, i32
  }
  func.func @transform_3(%arg0: i32) -> (i32, i32) {
    %c0_i32 = arith.constant 0 : i32
    %c0_i32_0 = arith.constant 0 : i32
    %c0_i32_1 = arith.constant 0 : i32
    return %c0_i32, %c0_i32_0 : i32, i32
  }
  func.func @transform_4(%arg0: i32) -> i32 {
    %c0_i32 = arith.constant 0 : i32
    %c0_i32_0 = arith.constant 0 : i32
    return %c0_i32 : i32
  }
  func.func @transform_5(%arg0: i32) -> (i32, i32) {
    %c0_i32 = arith.constant 0 : i32
    %c0_i32_0 = arith.constant 0 : i32
    return %c0_i32, %arg0 : i32, i32
  }
}

</mosaic_0001>

<bundles_post_ra>
// kernel: tpu_custom_call.1
= control target key start
LH: loop header
LB: loop body
LE: loop exit
PB: predicated region body
PF: predicated region fallthrough
CT: control target
= control target key end

     0   :  { %11 = vsyncpa [#allocation4], 0  ;;  %s444_s0 = inlined_call_operand.hbm [shape: f32[8,32], index: 0, kind: input, shape index: {}]   ;;  %s445_s1 = inlined_call_operand.hbm [shape: f32[32,32], index: 1, kind: input, shape index: {}]   ;;  %s446_s2 = inlined_call_operand.vmem [shape: f32[1,32], index: 2, kind: input, shape index: {}]   ;;  %s447_s3 = inlined_call_operand.vmem [shape: f32[1,32], index: 3, kind: input, shape index: {}]   ;;  %s448_s4 = inlined_call_operand.<no memory space> [shape: f32[1], index: 4, kind: input, shape index: {}]   ;;  %s449_s5 = inlined_call_operand.hbm [shape: f32[1,8], index: 5, kind: output, shape index: {}]  }
   0x1   :  { %12 = vsyncpa [#allocation7], 0 }
   0x2   :  { %13 = vsyncpa [#allocation5], 0  ;;  %s354_s18 = smov [#allocation3]   ;;  %s355_s20 = smov [#allocation6]  }
   0x3   :  { %s20_s19 = sshll.u32 %s354_s18, 4  ;;  %s29_s21 = sshll.u32 %s355_s20, 4  ;;  %s21_s19 = int_to_ptr.vmem [resolvable:$true] %s20_s19  ;;  %s392_s21 = int_to_ptr.vmem [resolvable:$true] %s29_s21 }
   0x4   :  { %s282_s24 = scalar_lea.hbm %s444_s0, 128 }
   0x5   :  { %p283_p0 = scmp.ne.s32.totalorder %s444_s0, %s282_s24  ;;  %p286_p1 = scmp.lt.u32.totalorder %s282_s24, %s444_s0 }
   0x7   :  { %p288_p2 = pnand %p286_p1, %p283_p0 }
   0x9   :  { %291 = shalt.err (!%p288_p2)
}
   0xa   :  { %s292_s29 = scalar_lea.vmem %s21_s19, 128  ;;  %p297_p4 = scmp.lt.s32.totalorder %s21_s19, %s21_s19 }
   0xb   :  { %p293_p3 = scmp.ne.s32.totalorder %s21_s19, %s292_s29  ;;  %p298_p5 = scmp.lt.s32.totalorder %s292_s29, %s292_s29 }
   0xd   :  { %p299_p6 = por %p298_p5, %p297_p4 }
   0xf   :  { %p300_p7 = pnand %p299_p6, %p293_p3 }
  0x11   :  { %303 = shalt.err (!%p300_p7)
}
  0x12   :  { %23 = dma.hbm_to_vmem [thread:$0]  %s444_s0, 128, %s21_s19, [#allocation4]  }
  0x13   :  { %s304_s9 = scalar_lea.hbm %s445_s1, 512 }
  0x14   :  { %p305_p8 = scmp.ne.s32.totalorder %s445_s1, %s304_s9  ;;  %p308_p9 = scmp.lt.u32.totalorder %s304_s9, %s445_s1 }
  0x16   :  { %p310_p10 = pnand %p308_p9, %p305_p8 }
  0x18   :  { %313 = shalt.err (!%p310_p10)
}
  0x19   :  { %s314_s14 = scalar_lea.vmem %s392_s21, 512  ;;  %p319_p12 = scmp.lt.s32.totalorder %s392_s21, %s392_s21 }
  0x1a   :  { %p315_p11 = scmp.ne.s32.totalorder %s392_s21, %s314_s14  ;;  %p320_p13 = scmp.lt.s32.totalorder %s314_s14, %s314_s14 }
  0x1c   :  { %p321_p0 = por %p320_p13, %p319_p12 }
  0x1e   :  { %p322_p1 = pnand %p321_p0, %p315_p11 }
  0x20   :  { %325 = shalt.err (!%p322_p1)
}
  0x21   :  { %s356_s0 = smov 128   ;;  %s357_s15 = smov 8  }
  0x22   :  { %35 = dma.hbm_to_vmem [thread:$0]  %s445_s1, 512, %s392_s21, [#allocation7], %s356_s0, %s356_s0, %s357_s15  }
  0x23   :  { %348 = dma.done.wait [#allocation4], 128  }
  0x24   :  { %349 = vsyncadd [#allocation4], 4294967168 }
  0x25   :  { %350 = dma.done.wait [#allocation7], 512  }
  0x26   :  { %351 = vsyncadd [#allocation7], 4294966784  ;;  %v358_v0 = vmov 0.0|0.0   ;;  %vm359_vm0 = vmmov 0   ;;  %v360_v1 = vmov 0.0   ;;  %v49_v2 = vld [vmem:[#allocation6] sm:$0xff]  ;;  %v137_v15 = vstv %s448_s4 }
  0x27   :  { %264 = vmatprep.subr.bf16.mxu0 %v358_v0  ;;  %256 = vmatprep.mubr.msk.f32.mxu0 %vm359_vm0, %v360_v1  ;;  %v50_v3 = vld [vmem:[#allocation6 + $0x8] sm:$0xff]  ;;  %v51_v4 = vld [vmem:[#allocation6 + $0x10] sm:$0xff]  ;;  %v52_v6 = vld [vmem:[#allocation6 + $0x18] sm:$0xff]  ;;  %vm60_vm1 = vcmask 261120   ;;  %vm219_vm2 = vcmask 57344  }
  0x28   :  { %259 = vmatprep.subr.mxu1 %v360_v1  ;;  %261 = vmatprep.mubr.msk.f32.mxu1 %vm359_vm0, %v360_v1  ;;  %v265_v5 = vpack.c.bf16 %v50_v3, %v49_v2  ;;  %v268_v7 = vpack.c.bf16 %v52_v6, %v51_v4  ;;  %v48_v8 = vld [vmem:[#allocation3] sm:$0xff] }
  0x29   :  { %v237_v9 = vld [vmem:[%s446_s2] ss:$0 sm:$0xff]  ;;  %s361_s2 = smov [#allocation8]  }
  0x2a   :  { %266 = vmatpush3.bf16.msra.mxu0 %v265_v5  ;;  %v135_v14 = vld [vmem:[%s447_s3] sm:$0x1]  ;;  %s227_s23 = sshll.u32 %s361_s2, 4  ;;  %s228_s23 = int_to_ptr.vmem [resolvable:$true] %s227_s23 }
  0x2b   :  { %267 = vmatprep.subr.bf16.mxu0 %v358_v0  ;;  %s326_s3 = scalar_lea.vmem %s228_s23, 16  ;;  %s330_s24 = scalar_lea.vmem %s228_s23, 32 }
  0x2c   :  { %p327_p2 = scmp.ne.s32.totalorder %s228_s23, %s326_s3  ;;  %p331_p3 = scmp.lt.s32.totalorder %s228_s23, %s228_s23 }
  0x2d   :  { %p332_p4 = scmp.lt.s32.totalorder %s330_s24, %s326_s3 }
  0x2e   :  { %269 = vmatpush3.bf16.msra.mxu0 %v268_v7 }
  0x2f   :  { %p333_p5 = por %p332_p4, %p331_p3 }
  0x31   :  { %257 = vmatmul.mubr.msk.f32.vlgmr.msra.gmra.mrb[0].mxu0 %vm60_vm1, %v48_v8  ;;  %p334_p6 = pnand %p333_p5, %p327_p2 }
 0x104   :  { %v130_v10 = vpop.f32.mrb[0].mxu0 }
 0x105   :  { %v131_v11 = vadd.f32 %v237_v9, %v130_v10  ;;  %v258_v12 = vpop.f32.mrb[1].mxu0 }
 0x107   :  { %v134_v13 = vmax.f32 %v131_v11, 0.0 }
 0x109   :  { %260 = vmatpush3.xpose.msk.msra.mxu1 %vm60_vm1, %v134_v13 }
 0x10c   :  { %262 = vmatmul.mubr.msk.f32.vlgmr.msra.gmra.mrb[0].mxu1 %vm60_vm1, %v135_v14 }
 0x1df   :  { %v210_v16 = vpop.f32.mrb[0].mxu1 }
 0x1e0   :  { %v211_v17 = vadd.f32 %v210_v16, %v137_v15  ;;  %v263_v18 = vpop.f32.mrb[1].mxu1 }
 0x1e2   :  { %v214_v19 = vsub.f32 0.0, %v211_v17 }
 0x1e4   :  { %v215_v20 = vmul.f32 1.442695, %v214_v19 }
 0x1e6   :  { %278 = vpow2.f32 %v215_v20 }
 0x1f0   :  { %v279_v21 = vpop.eup %278 }
 0x1f1   :  { %v217_v22 = vadd.f32 1.0, %v279_v21 }
 0x1f3   :  { %280 = vrcp.f32 %v217_v22 }
 0x1fd   :  { %v281_v23 = vpop.eup %280 }
 0x1fe   :  { %220 = vst.msk [vmem:[#allocation8] sm:$0x1] %vm219_vm2, %v281_v23 }
 0x1ff   :  { %337 = shalt.err (!%p334_p6)
}
 0x200   :  { %s338_s26 = scalar_lea.hbm %s449_s5, 16 }
 0x201   :  { %p339_p7 = scmp.ne.s32.totalorder %s449_s5, %s338_s26  ;;  %p342_p8 = scmp.lt.u32.totalorder %s338_s26, %s449_s5 }
 0x203   :  { %p344_p9 = pnand %p342_p8, %p339_p7 }
 0x205   :  { %347 = shalt.err (!%p344_p9)
}
 0x206   :  { %230 = dma.vmem_to_hbm [thread:$0]  %s228_s23, 16, %s449_s5, [#allocation5]  }
 0x207   :  { %352 = dma.done.wait [#allocation5], 16  }
 0x208   :  { %353 = vsyncadd [#allocation5], 4294967280 }
 0x209   :  { %234 = vsyncpa [#allocation4], 1 }
 0x20a   :  { %235 = vsyncpa [#allocation7], 1 }
 0x20b   :  { %236 = vsyncpa [#allocation5], 1 }

</bundles_post_ra>
